<compile_context>
chip_gen: v7x
topology: tpu7x:2x2x1
jax: 0.10.0
libtpu: 0.0.40
codegen_flags: <defaults>
</compile_context>

<pallas_src>
import jax
import jax.numpy as jnp
from jax.experimental import pallas as pl
from jax.experimental.pallas import tpu as pltpu

LANES = 128     # lane width of a vreg
SUBLANES = 8    # sublane depth of a vreg (f32)


def fused_sage_kernel(a1_ref, a2_ref, a3_ref, x0_ref,
                      wl1_ref, wr1_ref, b1_ref, al1_ref,
                      wl2_ref, wr2_ref, b2_ref, al2_ref,
                      wl3_ref, wr3_ref, b3_ref, al3_ref,
                      o_ref):
    """Three bipartite SAGEConv + PReLU hops, fully fused, VMEM-resident."""
    x0 = x0_ref[...]

    # ---- hop 1 ----
    agg1 = jnp.dot(a1_ref[...], x0, preferred_element_type=jnp.float32)
    h1 = (jnp.dot(agg1, wl1_ref[...], preferred_element_type=jnp.float32)
          + jnp.dot(x0[: a1_ref.shape[0], :], wr1_ref[...],
                    preferred_element_type=jnp.float32)
          + b1_ref[...])
    h1 = jnp.where(h1 > 0, h1, al1_ref[...] * h1)

    # ---- hop 2 ----
    agg2 = jnp.dot(a2_ref[...], h1, preferred_element_type=jnp.float32)
    h2 = (jnp.dot(agg2, wl2_ref[...], preferred_element_type=jnp.float32)
          + jnp.dot(h1[: a2_ref.shape[0], :], wr2_ref[...],
                    preferred_element_type=jnp.float32)
          + b2_ref[...])
    h2 = jnp.where(h2 > 0, h2, al2_ref[...] * h2)

    # ---- hop 3 ----
    agg3 = jnp.dot(a3_ref[...], h2, preferred_element_type=jnp.float32)
    h3 = (jnp.dot(agg3, wl3_ref[...], preferred_element_type=jnp.float32)
          + jnp.dot(h2[: a3_ref.shape[0], :], wr3_ref[...],
                    preferred_element_type=jnp.float32)
          + b3_ref[...])
    o_ref[...] = jnp.where(h3 > 0, h3, al3_ref[...] * h3)


# ---------------------------------------------------------------------------
# host-side glue
# ---------------------------------------------------------------------------

def _ceil_to(n, m):
    return ((n + m - 1) // m) * m


def _pad2d(x, rows, cols):
    return jnp.pad(x, ((0, rows - x.shape[0]), (0, cols - x.shape[1])))


def mean_adj(edge_index, n_src, n_dst):
    """Dense row-normalized adjacency from edge_index = [2, E] (src, dst)."""
    src, dst = edge_index[0], edge_index[1]
    A = jnp.zeros((n_dst, n_src), jnp.float32).at[dst, src].add(1.0)
    deg = jnp.maximum(A.sum(axis=1, keepdims=True), 1.0)   # scatter_mean (deg clamp)
    return A / deg


def init_params(key, in_channels, hidden_channels):
    """Deterministic synthetic init matching the module's parameter shapes."""
    params = []
    dims = [(in_channels, hidden_channels),
            (hidden_channels, hidden_channels),
            (hidden_channels, hidden_channels)]
    for c_in, c_out in dims:
        key, k1, k2 = jax.random.split(key, 3)
        scale = 1.0 / jnp.sqrt(jnp.float32(c_in))
        w_l = jax.random.uniform(k1, (c_in, c_out), jnp.float32, -scale, scale)  # lin_l.weight^T
        w_r = jax.random.uniform(k2, (c_in, c_out), jnp.float32, -scale, scale)  # lin_r.weight^T
        b_l = jnp.zeros((1, c_out), jnp.float32)                                 # lin_l.bias
        alpha = jnp.full((1, c_out), 0.25, jnp.float32)                          # nn.PReLU default
        params.append((w_l, b_l, w_r, alpha))
    return params


def encoder_forward(x, adjs, params, hidden_channels):
    """Fused Pallas forward: all three hops in one pallas_call."""
    n0 = x.shape[0]
    (_, _, (s0, d0)), (_, _, (s1, d1)), (_, _, (s2, d2)) = adjs
    n1, n2, n3 = d0, d1, d2
    n0p, n1p, n2p, n3p = (_ceil_to(n, SUBLANES) for n in (n0, n1, n2, n3))
    # PyG NeighborSampler convention: target nodes are the first n_dst source rows.
    assert n1p <= n0p and n2p <= n1p and n3p <= n2p

    # lane-dense, sublane-aligned padded operands
    x_p = _pad2d(x.astype(jnp.float32), n0p, LANES)
    a1 = _pad2d(mean_adj(adjs[0][0], s0, d0), n1p, n0p)
    a2 = _pad2d(mean_adj(adjs[1][0], s1, d1), n2p, n1p)
    a3 = _pad2d(mean_adj(adjs[2][0], s2, d2), n3p, n2p)

    packed = []
    for (w_l, b_l, w_r, alpha) in params:
        packed.extend([
            _pad2d(w_l, LANES, LANES),
            _pad2d(w_r, LANES, LANES),
            _pad2d(b_l, 1, LANES),
            _pad2d(alpha, 1, LANES),
        ])

    inputs = [a1, a2, a3, x_p] + packed

    def full(shape):
        return pl.BlockSpec(shape, lambda i: tuple(0 for _ in shape))

    out = pl.pallas_call(
        fused_sage_kernel,
        out_shape=jax.ShapeDtypeStruct((n3p, LANES), jnp.float32),
        grid=(1,),
        in_specs=[full(a.shape) for a in inputs],
        out_specs=full((n3p, LANES)),
        compiler_params=pltpu.CompilerParams(
            dimension_semantics=("arbitrary",),
            vmem_limit_bytes=32 * 1024 * 1024,
        ),
    )(*inputs)

    return out[:n3, :hidden_channels]


def encoder_reference(x, adjs, params):
    """Pure-JAX reference mirroring Encoder.forward."""
    for i, (edge_index, _, size) in enumerate(adjs):
        n_src, n_dst = size
        x_target = x[:n_dst]
        A = mean_adj(edge_index, n_src, n_dst)
        w_l, b_l, w_r, alpha = params[i]
        h = A @ x @ w_l + b_l + x_target @ w_r
        x = jnp.where(h > 0, h, alpha * h)
    return x


def make_edges(key, n_src, n_dst, k):
    """Deterministic synthetic neighbor sampling: k source neighbors per target node."""
    src = jax.random.randint(key, (n_dst * k,), 0, n_src)
    dst = jnp.repeat(jnp.arange(n_dst), k)
    return jnp.stack([src, dst]).astype(jnp.int32)


if __name__ == "__main__":
    in_channels, hidden_channels = 16, 32
    node_counts = [32, 16, 8, 4]  # n_src per hop: 32 -> 16 -> 8 -> 4 target nodes

    key = jax.random.PRNGKey(0)
    key, kx = jax.random.split(key)
    x = jax.random.normal(kx, (node_counts[0], in_channels), jnp.float32)

    adjs = []
    for i in range(3):
        key, ke = jax.random.split(key)
        ei = make_edges(ke, node_counts[i], node_counts[i + 1], k=4)
        adjs.append((ei, None, (node_counts[i], node_counts[i + 1])))

    params = init_params(jax.random.PRNGKey(42), in_channels, hidden_channels)

    out = encoder_forward(x, adjs, params, hidden_channels)
    out = jax.block_until_ready(out)

    ref = jax.block_until_ready(encoder_reference(x, adjs, params))

    assert out.shape == (node_counts[-1], hidden_channels)
    assert out.dtype == jnp.float32
    assert jnp.allclose(out, ref, rtol=1e-2, atol=1e-2)
    print("KERNEL_OK")
</pallas_src>

<mosaic_0001>
module attributes {stable_mosaic.version = 11 : i64} {
  func.func @fused_sage_kernel(%arg0: i32, %arg1: memref<16x32xf32, #tpu.memory_space<vmem>>, %arg2: memref<8x16xf32, #tpu.memory_space<vmem>>, %arg3: memref<8x8xf32, #tpu.memory_space<vmem>>, %arg4: memref<32x128xf32, #tpu.memory_space<vmem>>, %arg5: memref<128x128xf32, #tpu.memory_space<vmem>>, %arg6: memref<128x128xf32, #tpu.memory_space<vmem>>, %arg7: memref<1x128xf32, #tpu.memory_space<vmem>>, %arg8: memref<1x128xf32, #tpu.memory_space<vmem>>, %arg9: memref<128x128xf32, #tpu.memory_space<vmem>>, %arg10: memref<128x128xf32, #tpu.memory_space<vmem>>, %arg11: memref<1x128xf32, #tpu.memory_space<vmem>>, %arg12: memref<1x128xf32, #tpu.memory_space<vmem>>, %arg13: memref<128x128xf32, #tpu.memory_space<vmem>>, %arg14: memref<128x128xf32, #tpu.memory_space<vmem>>, %arg15: memref<1x128xf32, #tpu.memory_space<vmem>>, %arg16: memref<1x128xf32, #tpu.memory_space<vmem>>, %arg17: memref<8x128xf32, #tpu.memory_space<vmem>>) attributes {dimension_semantics = [#tpu.dimension_semantics<arbitrary>], iteration_bounds = array<i64: 1>, scalar_prefetch = 0 : i64, scratch_operands = 0 : i64, tpu.core_type = #tpu.core_type<tc>, window_params = [{pipeline_mode = #tpu.pipeline_mode<synchronous>, transform_indices = @transform_0, window_bounds = array<i64: 16, 32>}, {pipeline_mode = #tpu.pipeline_mode<synchronous>, transform_indices = @transform_1, window_bounds = array<i64: 8, 16>}, {pipeline_mode = #tpu.pipeline_mode<synchronous>, transform_indices = @transform_2, window_bounds = array<i64: 8, 8>}, {pipeline_mode = #tpu.pipeline_mode<synchronous>, transform_indices = @transform_3, window_bounds = array<i64: 32, 128>}, {pipeline_mode = #tpu.pipeline_mode<synchronous>, transform_indices = @transform_4, window_bounds = array<i64: 128, 128>}, {pipeline_mode = #tpu.pipeline_mode<synchronous>, transform_indices = @transform_5, window_bounds = array<i64: 128, 128>}, {pipeline_mode = #tpu.pipeline_mode<synchronous>, transform_indices = @transform_6, window_bounds = array<i64: 1, 128>}, {pipeline_mode = #tpu.pipeline_mode<synchronous>, transform_indices = @transform_7, window_bounds = array<i64: 1, 128>}, {pipeline_mode = #tpu.pipeline_mode<synchronous>, transform_indices = @transform_8, window_bounds = array<i64: 128, 128>}, {pipeline_mode = #tpu.pipeline_mode<synchronous>, transform_indices = @transform_9, window_bounds = array<i64: 128, 128>}, {pipeline_mode = #tpu.pipeline_mode<synchronous>, transform_indices = @transform_10, window_bounds = array<i64: 1, 128>}, {pipeline_mode = #tpu.pipeline_mode<synchronous>, transform_indices = @transform_11, window_bounds = array<i64: 1, 128>}, {pipeline_mode = #tpu.pipeline_mode<synchronous>, transform_indices = @transform_12, window_bounds = array<i64: 128, 128>}, {pipeline_mode = #tpu.pipeline_mode<synchronous>, transform_indices = @transform_13, window_bounds = array<i64: 128, 128>}, {pipeline_mode = #tpu.pipeline_mode<synchronous>, transform_indices = @transform_14, window_bounds = array<i64: 1, 128>}, {pipeline_mode = #tpu.pipeline_mode<synchronous>, transform_indices = @transform_15, window_bounds = array<i64: 1, 128>}, {pipeline_mode = #tpu.pipeline_mode<synchronous>, transform_indices = @transform_16, window_bounds = array<i64: 8, 128>}]} {
    %c0 = arith.constant 0 : index
    %c0_0 = arith.constant 0 : index
    %0 = vector.load %arg4[%c0, %c0_0] : memref<32x128xf32, #tpu.memory_space<vmem>>, vector<32x128xf32>
    %c0_1 = arith.constant 0 : index
    %c0_2 = arith.constant 0 : index
    %1 = vector.load %arg1[%c0_1, %c0_2] : memref<16x32xf32, #tpu.memory_space<vmem>>, vector<16x32xf32>
    %cst = arith.constant dense<0.000000e+00> : vector<16x128xf32>
    %2 = tpu.matmul %1, %0, %cst {dimension_numbers = #tpu.dot_dimension_numbers<[1], [0], [0], [1], [0, 0, 1, 1], [], []>} : vector<16x32xf32>, vector<32x128xf32>, vector<16x128xf32> -> vector<16x128xf32>
    %c0_3 = arith.constant 0 : index
    %c0_4 = arith.constant 0 : index
    %3 = vector.load %arg5[%c0_3, %c0_4] : memref<128x128xf32, #tpu.memory_space<vmem>>, vector<128x128xf32>
    %cst_5 = arith.constant dense<0.000000e+00> : vector<16x128xf32>
    %4 = tpu.matmul %2, %3, %cst_5 {dimension_numbers = #tpu.dot_dimension_numbers<[1], [0], [0], [1], [0, 0, 1, 1], [], []>} : vector<16x128xf32>, vector<128x128xf32>, vector<16x128xf32> -> vector<16x128xf32>
    %5 = vector.extract_strided_slice %0 {offsets = [0, 0], sizes = [16, 128], strides = [1, 1]} : vector<32x128xf32> to vector<16x128xf32>
    %c0_6 = arith.constant 0 : index
    %c0_7 = arith.constant 0 : index
    %6 = vector.load %arg6[%c0_6, %c0_7] : memref<128x128xf32, #tpu.memory_space<vmem>>, vector<128x128xf32>
    %cst_8 = arith.constant dense<0.000000e+00> : vector<16x128xf32>
    %7 = tpu.matmul %5, %6, %cst_8 {dimension_numbers = #tpu.dot_dimension_numbers<[1], [0], [0], [1], [0, 0, 1, 1], [], []>} : vector<16x128xf32>, vector<128x128xf32>, vector<16x128xf32> -> vector<16x128xf32>
    %8 = arith.addf %4, %7 : vector<16x128xf32>
    %c0_9 = arith.constant 0 : index
    %c0_10 = arith.constant 0 : index
    %9 = vector.load %arg7[%c0_9, %c0_10] : memref<1x128xf32, #tpu.memory_space<vmem>>, vector<1x128xf32>
    %10 = vector.broadcast %9 : vector<1x128xf32> to vector<16x128xf32>
    %11 = arith.addf %8, %10 : vector<16x128xf32>
    %cst_11 = arith.constant 0.000000e+00 : f32
    %12 = vector.broadcast %cst_11 : f32 to vector<16x128xf32>
    %13 = arith.cmpf ogt, %11, %12 : vector<16x128xf32>
    %c0_12 = arith.constant 0 : index
    %c0_13 = arith.constant 0 : index
    %14 = vector.load %arg8[%c0_12, %c0_13] : memref<1x128xf32, #tpu.memory_space<vmem>>, vector<1x128xf32>
    %15 = vector.broadcast %14 : vector<1x128xf32> to vector<16x128xf32>
    %16 = arith.mulf %15, %11 : vector<16x128xf32>
    %17 = arith.select %13, %11, %16 : vector<16x128xi1>, vector<16x128xf32>
    %c0_14 = arith.constant 0 : index
    %c0_15 = arith.constant 0 : index
    %18 = vector.load %arg2[%c0_14, %c0_15] : memref<8x16xf32, #tpu.memory_space<vmem>>, vector<8x16xf32>
    %cst_16 = arith.constant dense<0.000000e+00> : vector<8x128xf32>
    %19 = tpu.matmul %18, %17, %cst_16 {dimension_numbers = #tpu.dot_dimension_numbers<[1], [0], [0], [1], [0, 0, 1, 1], [], []>} : vector<8x16xf32>, vector<16x128xf32>, vector<8x128xf32> -> vector<8x128xf32>
    %c0_17 = arith.constant 0 : index
    %c0_18 = arith.constant 0 : index
    %20 = vector.load %arg9[%c0_17, %c0_18] : memref<128x128xf32, #tpu.memory_space<vmem>>, vector<128x128xf32>
    %cst_19 = arith.constant dense<0.000000e+00> : vector<8x128xf32>
    %21 = tpu.matmul %19, %20, %cst_19 {dimension_numbers = #tpu.dot_dimension_numbers<[1], [0], [0], [1], [0, 0, 1, 1], [], []>} : vector<8x128xf32>, vector<128x128xf32>, vector<8x128xf32> -> vector<8x128xf32>
    %22 = vector.extract_strided_slice %17 {offsets = [0, 0], sizes = [8, 128], strides = [1, 1]} : vector<16x128xf32> to vector<8x128xf32>
    %c0_20 = arith.constant 0 : index
    %c0_21 = arith.constant 0 : index
    %23 = vector.load %arg10[%c0_20, %c0_21] : memref<128x128xf32, #tpu.memory_space<vmem>>, vector<128x128xf32>
    %cst_22 = arith.constant dense<0.000000e+00> : vector<8x128xf32>
    %24 = tpu.matmul %22, %23, %cst_22 {dimension_numbers = #tpu.dot_dimension_numbers<[1], [0], [0], [1], [0, 0, 1, 1], [], []>} : vector<8x128xf32>, vector<128x128xf32>, vector<8x128xf32> -> vector<8x128xf32>
    %25 = arith.addf %21, %24 : vector<8x128xf32>
    %c0_23 = arith.constant 0 : index
    %c0_24 = arith.constant 0 : index
    %26 = vector.load %arg11[%c0_23, %c0_24] : memref<1x128xf32, #tpu.memory_space<vmem>>, vector<1x128xf32>
    %27 = vector.broadcast %26 : vector<1x128xf32> to vector<8x128xf32>
    %28 = arith.addf %25, %27 : vector<8x128xf32>
    %cst_25 = arith.constant 0.000000e+00 : f32
    %29 = vector.broadcast %cst_25 : f32 to vector<8x128xf32>
    %30 = arith.cmpf ogt, %28, %29 : vector<8x128xf32>
    %c0_26 = arith.constant 0 : index
    %c0_27 = arith.constant 0 : index
    %31 = vector.load %arg12[%c0_26, %c0_27] : memref<1x128xf32, #tpu.memory_space<vmem>>, vector<1x128xf32>
    %32 = vector.broadcast %31 : vector<1x128xf32> to vector<8x128xf32>
    %33 = arith.mulf %32, %28 : vector<8x128xf32>
    %34 = arith.select %30, %28, %33 : vector<8x128xi1>, vector<8x128xf32>
    %c0_28 = arith.constant 0 : index
    %c0_29 = arith.constant 0 : index
    %35 = vector.load %arg3[%c0_28, %c0_29] : memref<8x8xf32, #tpu.memory_space<vmem>>, vector<8x8xf32>
    %cst_30 = arith.constant dense<0.000000e+00> : vector<8x128xf32>
    %36 = tpu.matmul %35, %34, %cst_30 {dimension_numbers = #tpu.dot_dimension_numbers<[1], [0], [0], [1], [0, 0, 1, 1], [], []>} : vector<8x8xf32>, vector<8x128xf32>, vector<8x128xf32> -> vector<8x128xf32>
    %c0_31 = arith.constant 0 : index
    %c0_32 = arith.constant 0 : index
    %37 = vector.load %arg13[%c0_31, %c0_32] : memref<128x128xf32, #tpu.memory_space<vmem>>, vector<128x128xf32>
    %cst_33 = arith.constant dense<0.000000e+00> : vector<8x128xf32>
    %38 = tpu.matmul %36, %37, %cst_33 {dimension_numbers = #tpu.dot_dimension_numbers<[1], [0], [0], [1], [0, 0, 1, 1], [], []>} : vector<8x128xf32>, vector<128x128xf32>, vector<8x128xf32> -> vector<8x128xf32>
    %c0_34 = arith.constant 0 : index
    %c0_35 = arith.constant 0 : index
    %39 = vector.load %arg14[%c0_34, %c0_35] : memref<128x128xf32, #tpu.memory_space<vmem>>, vector<128x128xf32>
    %cst_36 = arith.constant dense<0.000000e+00> : vector<8x128xf32>
    %40 = tpu.matmul %34, %39, %cst_36 {dimension_numbers = #tpu.dot_dimension_numbers<[1], [0], [0], [1], [0, 0, 1, 1], [], []>} : vector<8x128xf32>, vector<128x128xf32>, vector<8x128xf32> -> vector<8x128xf32>
    %41 = arith.addf %38, %40 : vector<8x128xf32>
    %c0_37 = arith.constant 0 : index
    %c0_38 = arith.constant 0 : index
    %42 = vector.load %arg15[%c0_37, %c0_38] : memref<1x128xf32, #tpu.memory_space<vmem>>, vector<1x128xf32>
    %43 = vector.broadcast %42 : vector<1x128xf32> to vector<8x128xf32>
    %44 = arith.addf %41, %43 : vector<8x128xf32>
    %cst_39 = arith.constant 0.000000e+00 : f32
    %45 = vector.broadcast %cst_39 : f32 to vector<8x128xf32>
    %46 = arith.cmpf ogt, %44, %45 : vector<8x128xf32>
    %c0_40 = arith.constant 0 : index
    %c0_41 = arith.constant 0 : index
    %47 = vector.load %arg16[%c0_40, %c0_41] : memref<1x128xf32, #tpu.memory_space<vmem>>, vector<1x128xf32>
    %48 = vector.broadcast %47 : vector<1x128xf32> to vector<8x128xf32>
    %49 = arith.mulf %48, %44 : vector<8x128xf32>
    %50 = arith.select %46, %44, %49 : vector<8x128xi1>, vector<8x128xf32>
    %c0_42 = arith.constant 0 : index
    %c0_43 = arith.constant 0 : index
    %51 = vector.load %arg17[%c0_42, %c0_43] : memref<8x128xf32, #tpu.memory_space<vmem>>, vector<8x128xf32>
    tpu.vector_store %arg17[%c0_42, %c0_43], %50 {strides = array<i32>} : memref<8x128xf32, #tpu.memory_space<vmem>>, vector<8x128xf32>,
    return
  }
  func.func @transform_0(%arg0: i32) -> (i32, i32) {
    %c0_i32 = arith.constant 0 : i32
    %c0_i32_0 = arith.constant 0 : i32
    %c0_i32_1 = arith.constant 0 : i32
    return %c0_i32, %c0_i32_0 : i32, i32
  }
  func.func @transform_1(%arg0: i32) -> (i32, i32) {
    %c0_i32 = arith.constant 0 : i32
    %c0_i32_0 = arith.constant 0 : i32
    %c0_i32_1 = arith.constant 0 : i32
    return %c0_i32, %c0_i32_0 : i32, i32
  }
  func.func @transform_2(%arg0: i32) -> (i32, i32) {
    %c0_i32 = arith.constant 0 : i32
    %c0_i32_0 = arith.constant 0 : i32
    %c0_i32_1 = arith.constant 0 : i32
    return %c0_i32, %c0_i32_0 : i32, i32
  }
  func.func @transform_3(%arg0: i32) -> (i32, i32) {
    %c0_i32 = arith.constant 0 : i32
    %c0_i32_0 = arith.constant 0 : i32
    %c0_i32_1 = arith.constant 0 : i32
    return %c0_i32, %c0_i32_0 : i32, i32
  }
  func.func @transform_4(%arg0: i32) -> (i32, i32) {
    %c0_i32 = arith.constant 0 : i32
    %c0_i32_0 = arith.constant 0 : i32
    %c0_i32_1 = arith.constant 0 : i32
    return %c0_i32, %c0_i32_0 : i32, i32
  }
  func.func @transform_5(%arg0: i32) -> (i32, i32) {
    %c0_i32 = arith.constant 0 : i32
    %c0_i32_0 = arith.constant 0 : i32
    %c0_i32_1 = arith.constant 0 : i32
    return %c0_i32, %c0_i32_0 : i32, i32
  }
  func.func @transform_6(%arg0: i32) -> (i32, i32) {
    %c0_i32 = arith.constant 0 : i32
    %c0_i32_0 = arith.constant 0 : i32
    %c0_i32_1 = arith.constant 0 : i32
    return %c0_i32, %c0_i32_0 : i32, i32
  }
  func.func @transform_7(%arg0: i32) -> (i32, i32) {
    %c0_i32 = arith.constant 0 : i32
    %c0_i32_0 = arith.constant 0 : i32
    %c0_i32_1 = arith.constant 0 : i32
    return %c0_i32, %c0_i32_0 : i32, i32
  }
  func.func @transform_8(%arg0: i32) -> (i32, i32) {
    %c0_i32 = arith.constant 0 : i32
    %c0_i32_0 = arith.constant 0 : i32
    %c0_i32_1 = arith.constant 0 : i32
    return %c0_i32, %c0_i32_0 : i32, i32
  }
  func.func @transform_9(%arg0: i32) -> (i32, i32) {
    %c0_i32 = arith.constant 0 : i32
    %c0_i32_0 = arith.constant 0 : i32
    %c0_i32_1 = arith.constant 0 : i32
    return %c0_i32, %c0_i32_0 : i32, i32
  }
  func.func @transform_10(%arg0: i32) -> (i32, i32) {
    %c0_i32 = arith.constant 0 : i32
    %c0_i32_0 = arith.constant 0 : i32
    %c0_i32_1 = arith.constant 0 : i32
    return %c0_i32, %c0_i32_0 : i32, i32
  }
  func.func @transform_11(%arg0: i32) -> (i32, i32) {
    %c0_i32 = arith.constant 0 : i32
    %c0_i32_0 = arith.constant 0 : i32
    %c0_i32_1 = arith.constant 0 : i32
    return %c0_i32, %c0_i32_0 : i32, i32
  }
  func.func @transform_12(%arg0: i32) -> (i32, i32) {
    %c0_i32 = arith.constant 0 : i32
    %c0_i32_0 = arith.constant 0 : i32
    %c0_i32_1 = arith.constant 0 : i32
    return %c0_i32, %c0_i32_0 : i32, i32
  }
  func.func @transform_13(%arg0: i32) -> (i32, i32) {
    %c0_i32 = arith.constant 0 : i32
    %c0_i32_0 = arith.constant 0 : i32
    %c0_i32_1 = arith.constant 0 : i32
    return %c0_i32, %c0_i32_0 : i32, i32
  }
  func.func @transform_14(%arg0: i32) -> (i32, i32) {
    %c0_i32 = arith.constant 0 : i32
    %c0_i32_0 = arith.constant 0 : i32
    %c0_i32_1 = arith.constant 0 : i32
    return %c0_i32, %c0_i32_0 : i32, i32
  }
  func.func @transform_15(%arg0: i32) -> (i32, i32) {
    %c0_i32 = arith.constant 0 : i32
    %c0_i32_0 = arith.constant 0 : i32
    %c0_i32_1 = arith.constant 0 : i32
    return %c0_i32, %c0_i32_0 : i32, i32
  }
  func.func @transform_16(%arg0: i32) -> (i32, i32) {
    %c0_i32 = arith.constant 0 : i32
    %c0_i32_0 = arith.constant 0 : i32
    %c0_i32_1 = arith.constant 0 : i32
    return %c0_i32, %c0_i32_0 : i32, i32
  }
}

</mosaic_0001>

<bundles_post_ra>
// kernel: tpu_custom_call.1
= control target key start
LH: loop header
LB: loop body
LE: loop exit
PB: predicated region body
PF: predicated region fallthrough
CT: control target
= control target key end

     0   :  { %s2155_s0 = inlined_call_operand.hbm [shape: f32[16,32], index: 0, kind: input, shape index: {}]   ;;  %s2156_s1 = inlined_call_operand.hbm [shape: f32[8,16], index: 1, kind: input, shape index: {}]   ;;  %s2157_s2 = inlined_call_operand.hbm [shape: f32[8,8], index: 2, kind: input, shape index: {}]   ;;  %s2158_s3 = inlined_call_operand.hbm [shape: f32[32,128], index: 3, kind: input, shape index: {}]   ;;  %s2159_s4 = inlined_call_operand.hbm [shape: f32[128,128], index: 4, kind: input, shape index: {}]   ;;  %s2160_s5 = inlined_call_operand.hbm [shape: f32[128,128], index: 5, kind: input, shape index: {}]   ;;  %s2161_s6 = inlined_call_operand.vmem [shape: f32[1,128], index: 6, kind: input, shape index: {}]   ;;  %s2162_s7 = inlined_call_operand.vmem [shape: f32[1,128], index: 7, kind: input, shape index: {}]   ;;  %s2163_s8 = inlined_call_operand.hbm [shape: f32[128,128], index: 8, kind: input, shape index: {}]   ;;  %s2164_s9 = inlined_call_operand.hbm [shape: f32[128,128], index: 9, kind: input, shape index: {}]   ;;  %s2165_s10 = inlined_call_operand.vmem [shape: f32[1,128], index: 10, kind: input, shape index: {}]   ;;  %s2166_s11 = inlined_call_operand.vmem [shape: f32[1,128], index: 11, kind: input, shape index: {}]   ;;  %s2167_s12 = inlined_call_operand.hbm [shape: f32[128,128], index: 12, kind: input, shape index: {}]   ;;  %s2168_s13 = inlined_call_operand.hbm [shape: f32[128,128], index: 13, kind: input, shape index: {}]   ;;  %s2169_s14 = inlined_call_operand.vmem [shape: f32[1,128], index: 14, kind: input, shape index: {}]   ;;  %s2170_s15 = inlined_call_operand.vmem [shape: f32[1,128], index: 15, kind: input, shape index: {}]   ;;  %s2171_s16 = inlined_call_operand.hbm [shape: f32[8,128], index: 16, kind: output, shape index: {}]  }
   0x1   :  { %2173 = sst [smem:[#allocation27_spill]] %s2155_s0 }
   0x2   :  { %21 = vsyncpa [#allocation3], 0 }
   0x3   :  { %22 = vsyncpa [#allocation6], 0 }
   0x4   :  { %23 = vsyncpa [#allocation9], 0 }
   0x5   :  { %24 = vsyncpa [#allocation12], 0 }
   0x6   :  { %25 = vsyncpa [#allocation15], 0 }
   0x7   :  { %26 = vsyncpa [#allocation18], 0 }
   0x8   :  { %27 = vsyncpa [#allocation4], 0  ;;  %s1832_s21 = smov [#allocation5]   ;;  %s1576_s25 = scalar_lea.hbm %s2156_s1, 128 }
   0x9   :  { %s46_s22 = sshll.u32 %s1832_s21, 4  ;;  %p1577_p0 = scmp.ne.s32.totalorder %s2156_s1, %s1576_s25  ;;  %s47_s22 = int_to_ptr.vmem [resolvable:$true] %s46_s22 }
   0xa   :  { %p1580_p1 = scmp.lt.u32.totalorder %s1576_s25, %s2156_s1 }
   0xc   :  { %p1582_p2 = pnand %p1580_p1, %p1577_p0 }
   0xe   :  { %1585 = shalt.err (!%p1582_p2)
}
   0xf   :  { %s1586_s30 = scalar_lea.vmem %s47_s22, 128  ;;  %p1591_p4 = scmp.lt.s32.totalorder %s47_s22, %s47_s22 }
  0x10   :  { %p1587_p3 = scmp.ne.s32.totalorder %s47_s22, %s1586_s30  ;;  %p1592_p5 = scmp.lt.s32.totalorder %s1586_s30, %s1586_s30 }
  0x12   :  { %p1593_p6 = por %p1592_p5, %p1591_p4 }
  0x14   :  { %p1594_p7 = pnand %p1593_p6, %p1587_p3 }
  0x16   :  { %1597 = shalt.err (!%p1594_p7)
}
  0x17   :  { %49 = dma.hbm_to_vmem [thread:$0]  %s2156_s1, 128, %s47_s22, [#allocation6]  }
  0x18   :  { %s1833_s18 = smov [#allocation8]   ;;  %s1834_s20 = smov [#allocation11]  }
  0x19   :  { %s65_s19 = sshll.u32 %s1833_s18, 4  ;;  %s89_s21 = sshll.u32 %s1834_s20, 4  ;;  %s66_s19 = int_to_ptr.vmem [resolvable:$true] %s65_s19  ;;  %s90_s21 = int_to_ptr.vmem [resolvable:$true] %s89_s21 }
  0x1a   :  { %s1598_s25 = scalar_lea.hbm %s2158_s3, 512 }
  0x1b   :  { %p1599_p8 = scmp.ne.s32.totalorder %s2158_s3, %s1598_s25  ;;  %p1602_p9 = scmp.lt.u32.totalorder %s1598_s25, %s2158_s3 }
  0x1d   :  { %p1604_p10 = pnand %p1602_p9, %p1599_p8 }
  0x1f   :  { %1607 = shalt.err (!%p1604_p10)
}
  0x20   :  { %s1608_s1 = scalar_lea.vmem %s66_s19, 512  ;;  %p1613_p12 = scmp.lt.s32.totalorder %s66_s19, %s66_s19 }
  0x21   :  { %p1609_p11 = scmp.ne.s32.totalorder %s66_s19, %s1608_s1  ;;  %p1614_p13 = scmp.lt.s32.totalorder %s1608_s1, %s1608_s1 }
  0x23   :  { %p1615_p0 = por %p1614_p13, %p1613_p12 }
  0x25   :  { %p1616_p1 = pnand %p1615_p0, %p1609_p11 }
  0x27   :  { %1619 = shalt.err (!%p1616_p1)
}
  0x28   :  { %s1835_s22 = smov 128   ;;  %s1836_s30 = smov 8  }
  0x29   :  { %71 = dma.hbm_to_vmem [thread:$0]  %s2158_s3, 512, %s66_s19, [#allocation9], %s1835_s22, %s1835_s22, %s1836_s30  }
  0x2a   :  { %s1620_s23 = scalar_lea.hbm %s2160_s5, 2048 }
  0x2b   :  { %p1621_p2 = scmp.ne.s32.totalorder %s2160_s5, %s1620_s23  ;;  %p1624_p3 = scmp.lt.u32.totalorder %s1620_s23, %s2160_s5 }
  0x2d   :  { %p1626_p4 = pnand %p1624_p3, %p1621_p2 }
  0x2f   :  { %1629 = shalt.err (!%p1626_p4)
}
  0x30   :  { %s1630_s28 = scalar_lea.vmem %s90_s21, 2048  ;;  %p1635_p6 = scmp.lt.s32.totalorder %s90_s21, %s90_s21 }
  0x31   :  { %p1631_p5 = scmp.ne.s32.totalorder %s90_s21, %s1630_s28  ;;  %p1636_p7 = scmp.lt.s32.totalorder %s1630_s28, %s1630_s28 }
  0x33   :  { %p1637_p8 = por %p1636_p7, %p1635_p6 }
  0x35   :  { %p1638_p9 = pnand %p1637_p8, %p1631_p5 }
  0x37   :  { %1641 = shalt.err (!%p1638_p9)
}
  0x38   :  { %95 = dma.hbm_to_vmem [thread:$0]  %s2160_s5, 2048, %s90_s21, [#allocation12], %s1835_s22, %s1835_s22, %s1836_s30  }
  0x39   :  { %s1837_s29 = smov [#allocation14]   ;;  %s1838_s0 = smov [#allocation2]  }
  0x3a   :  { %s117_s1 = sshll.u32 %s1837_s29, 4  ;;  %s33_s17 = sshll.u32 %s1838_s0, 4  ;;  %s118_s1 = int_to_ptr.vmem [resolvable:$true] %s117_s1  ;;  %s34_s17 = int_to_ptr.vmem [resolvable:$true] %s33_s17 }
  0x3b   :  { %s1642_s23 = scalar_lea.hbm %s2164_s9, 2048 }
  0x3c   :  { %p1643_p10 = scmp.ne.s32.totalorder %s2164_s9, %s1642_s23  ;;  %p1646_p11 = scmp.lt.u32.totalorder %s1642_s23, %s2164_s9 }
  0x3e   :  { %p1648_p12 = pnand %p1646_p11, %p1643_p10 }
  0x40   :  { %1651 = shalt.err (!%p1648_p12)
}
  0x41   :  { %s1652_s5 = scalar_lea.vmem %s118_s1, 2048  ;;  %p1657_p0 = scmp.lt.s32.totalorder %s118_s1, %s118_s1 }
  0x42   :  { %p1653_p13 = scmp.ne.s32.totalorder %s118_s1, %s1652_s5  ;;  %p1658_p1 = scmp.lt.s32.totalorder %s1652_s5, %s1652_s5 }
  0x44   :  { %p1659_p2 = por %p1658_p1, %p1657_p0 }
  0x46   :  { %p1660_p3 = pnand %p1659_p2, %p1653_p13 }
  0x48   :  { %1663 = shalt.err (!%p1660_p3)
}
  0x49   :  { %123 = dma.hbm_to_vmem [thread:$0]  %s2164_s9, 2048, %s118_s1, [#allocation15], %s1835_s22, %s1835_s22, %s1836_s30  }
  0x4a   :  { %s2174_s29 = sld [smem:[#allocation27_spill]] }
  0x50   :  { %s1664_s0 = scalar_lea.hbm %s2174_s29, 256 }
  0x51   :  { %p1665_p4 = scmp.ne.s32.totalorder %s2174_s29, %s1664_s0  ;;  %p1668_p5 = scmp.lt.u32.totalorder %s1664_s0, %s2174_s29 }
  0x53   :  { %p1670_p6 = pnand %p1668_p5, %p1665_p4 }
  0x55   :  { %1673 = shalt.err (!%p1670_p6)
}
  0x56   :  { %s1674_s25 = scalar_lea.vmem %s34_s17, 256  ;;  %p1679_p8 = scmp.lt.s32.totalorder %s34_s17, %s34_s17 }
  0x57   :  { %p1675_p7 = scmp.ne.s32.totalorder %s34_s17, %s1674_s25  ;;  %p1680_p9 = scmp.lt.s32.totalorder %s1674_s25, %s1674_s25 }
  0x59   :  { %p1681_p10 = por %p1680_p9, %p1679_p8 }
  0x5b   :  { %p1682_p11 = pnand %p1681_p10, %p1675_p7 }
  0x5d   :  { %1685 = shalt.err (!%p1682_p11)
}
  0x5e   :  { %39 = dma.hbm_to_vmem [thread:$0]  %s2174_s29, 256, %s34_s17, [#allocation3], %s1835_s22, %s1835_s22, %s1836_s30  }
  0x5f   :  { %s1839_s26 = smov [#allocation7]   ;;  %s1840_s5 = smov [#allocation10]  }
  0x60   :  { %s56_s27 = sshll.u32 %s1839_s26, 4  ;;  %s77_s21 = sshll.u32 %s1840_s5, 4  ;;  %s57_s27 = int_to_ptr.vmem [resolvable:$true] %s56_s27  ;;  %s78_s21 = int_to_ptr.vmem [resolvable:$true] %s77_s21 }
  0x61   :  { %s1686_s19 = scalar_lea.hbm %s2157_s2, 128 }
  0x62   :  { %p1687_p12 = scmp.ne.s32.totalorder %s2157_s2, %s1686_s19  ;;  %p1690_p13 = scmp.lt.u32.totalorder %s1686_s19, %s2157_s2 }
  0x64   :  { %p1692_p0 = pnand %p1690_p13, %p1687_p12 }
  0x66   :  { %1695 = shalt.err (!%p1692_p0)
}
  0x67   :  { %s1696_s17 = scalar_lea.vmem %s57_s27, 128  ;;  %p1701_p2 = scmp.lt.s32.totalorder %s57_s27, %s57_s27 }
  0x68   :  { %p1697_p1 = scmp.ne.s32.totalorder %s57_s27, %s1696_s17  ;;  %p1702_p3 = scmp.lt.s32.totalorder %s1696_s17, %s1696_s17 }
  0x6a   :  { %p1703_p4 = por %p1702_p3, %p1701_p2 }
  0x6c   :  { %p1704_p5 = pnand %p1703_p4, %p1697_p1 }
  0x6e   :  { %1707 = shalt.err (!%p1704_p5)
}
  0x6f   :  { %59 = dma.hbm_to_vmem [thread:$0]  %s2157_s2, 128, %s57_s27, [#allocation6]  }
  0x70   :  { %s1708_s1 = scalar_lea.hbm %s2159_s4, 2048 }
  0x71   :  { %p1709_p6 = scmp.ne.s32.totalorder %s2159_s4, %s1708_s1  ;;  %p1712_p7 = scmp.lt.u32.totalorder %s1708_s1, %s2159_s4 }
  0x73   :  { %p1714_p8 = pnand %p1712_p7, %p1709_p6 }
  0x75   :  { %1717 = shalt.err (!%p1714_p8)
}
  0x76   :  { %s1718_s19 = scalar_lea.vmem %s78_s21, 2048  ;;  %p1723_p10 = scmp.lt.s32.totalorder %s78_s21, %s78_s21 }
  0x77   :  { %p1719_p9 = scmp.ne.s32.totalorder %s78_s21, %s1718_s19  ;;  %p1724_p11 = scmp.lt.s32.totalorder %s1718_s19, %s1718_s19 }
  0x79   :  { %p1725_p12 = por %p1724_p11, %p1723_p10 }
  0x7b   :  { %p1726_p13 = pnand %p1725_p12, %p1719_p9 }
  0x7d   :  { %1729 = shalt.err (!%p1726_p13)
}
  0x7e   :  { %83 = dma.hbm_to_vmem [thread:$0]  %s2159_s4, 2048, %s78_s21, [#allocation9], %s1835_s22, %s1835_s22, %s1836_s30  }
  0x7f   :  { %s1841_s0 = smov [#allocation13]   ;;  %s1842_s20 = smov [#allocation16]  }
  0x80   :  { %s105_s18 = sshll.u32 %s1841_s0, 4  ;;  %s133_s23 = sshll.u32 %s1842_s20, 4  ;;  %s106_s18 = int_to_ptr.vmem [resolvable:$true] %s105_s18  ;;  %s134_s23 = int_to_ptr.vmem [resolvable:$true] %s133_s23 }
  0x81   :  { %s1730_s24 = scalar_lea.hbm %s2163_s8, 2048 }
  0x82   :  { %p1731_p0 = scmp.ne.s32.totalorder %s2163_s8, %s1730_s24  ;;  %p1734_p1 = scmp.lt.u32.totalorder %s1730_s24, %s2163_s8 }
  0x84   :  { %p1736_p2 = pnand %p1734_p1, %p1731_p0 }
  0x86   :  { %1739 = shalt.err (!%p1736_p2)
}
  0x87   :  { %s1740_s4 = scalar_lea.vmem %s106_s18, 2048  ;;  %p1745_p4 = scmp.lt.s32.totalorder %s106_s18, %s106_s18 }
  0x88   :  { %p1741_p3 = scmp.ne.s32.totalorder %s106_s18, %s1740_s4  ;;  %p1746_p5 = scmp.lt.s32.totalorder %s1740_s4, %s1740_s4 }
  0x8a   :  { %p1747_p6 = por %p1746_p5, %p1745_p4 }
  0x8c   :  { %p1748_p7 = pnand %p1747_p6, %p1741_p3 }
  0x8e   :  { %1751 = shalt.err (!%p1748_p7)
}
  0x8f   :  { %111 = dma.hbm_to_vmem [thread:$0]  %s2163_s8, 2048, %s106_s18, [#allocation12], %s1835_s22, %s1835_s22, %s1836_s30  }
  0x90   :  { %s1752_s19 = scalar_lea.hbm %s2167_s12, 2048 }
  0x91   :  { %p1753_p8 = scmp.ne.s32.totalorder %s2167_s12, %s1752_s19  ;;  %p1756_p9 = scmp.lt.u32.totalorder %s1752_s19, %s2167_s12 }
  0x93   :  { %p1758_p10 = pnand %p1756_p9, %p1753_p8 }
  0x95   :  { %1761 = shalt.err (!%p1758_p10)
}
  0x96   :  { %s1762_s17 = scalar_lea.vmem %s134_s23, 2048  ;;  %p1767_p12 = scmp.lt.s32.totalorder %s134_s23, %s134_s23 }
  0x97   :  { %p1763_p11 = scmp.ne.s32.totalorder %s134_s23, %s1762_s17  ;;  %p1768_p13 = scmp.lt.s32.totalorder %s1762_s17, %s1762_s17 }
  0x99   :  { %p1769_p0 = por %p1768_p13, %p1767_p12 }
  0x9b   :  { %p1770_p1 = pnand %p1769_p0, %p1763_p11 }
  0x9d   :  { %1773 = shalt.err (!%p1770_p1)
}
  0x9e   :  { %139 = dma.hbm_to_vmem [thread:$0]  %s2167_s12, 2048, %s134_s23, [#allocation15], %s1835_s22, %s1835_s22, %s1836_s30  }
  0x9f   :  { %s1843_s29 = smov [#allocation17]   ;;  %s1774_s1 = scalar_lea.hbm %s2168_s13, 2048 }
  0xa0   :  { %s145_s24 = sshll.u32 %s1843_s29, 4  ;;  %p1775_p2 = scmp.ne.s32.totalorder %s2168_s13, %s1774_s1  ;;  %s146_s24 = int_to_ptr.vmem [resolvable:$true] %s145_s24 }
  0xa1   :  { %p1778_p3 = scmp.lt.u32.totalorder %s1774_s1, %s2168_s13 }
  0xa3   :  { %p1780_p4 = pnand %p1778_p3, %p1775_p2 }
  0xa5   :  { %1783 = shalt.err (!%p1780_p4)
}
  0xa6   :  { %s1784_s28 = scalar_lea.vmem %s146_s24, 2048  ;;  %p1789_p6 = scmp.lt.s32.totalorder %s146_s24, %s146_s24 }
  0xa7   :  { %p1785_p5 = scmp.ne.s32.totalorder %s146_s24, %s1784_s28  ;;  %p1790_p7 = scmp.lt.s32.totalorder %s1784_s28, %s1784_s28 }
  0xa9   :  { %p1791_p8 = por %p1790_p7, %p1789_p6 }
  0xab   :  { %p1792_p9 = pnand %p1791_p8, %p1785_p5 }
  0xad   :  { %1795 = shalt.err (!%p1792_p9)
}
  0xae   :  { %151 = dma.hbm_to_vmem [thread:$0]  %s2168_s13, 2048, %s146_s24, [#allocation18], %s1835_s22, %s1835_s22, %s1836_s30  }
  0xaf   :  { %1818 = dma.done.wait [#allocation3], 256  }
  0xb0   :  { %1819 = vsyncadd [#allocation3], 4294967040 }
  0xb1   :  { %1820 = dma.done.wait [#allocation6], 256  }
  0xb2   :  { %1821 = vsyncadd [#allocation6], 4294967040 }
  0xb3   :  { %1822 = dma.done.wait [#allocation9], 2560  }
  0xb4   :  { %1823 = vsyncadd [#allocation9], 4294964736 }
  0xb5   :  { %1824 = dma.done.wait [#allocation12], 4096  }
  0xb6   :  { %1825 = vsyncadd [#allocation12], 4294963200 }
  0xb7   :  { %1826 = dma.done.wait [#allocation15], 4096  }
  0xb8   :  { %1827 = vsyncadd [#allocation15], 4294963200 }
  0xb9   :  { %1828 = dma.done.wait [#allocation18], 2048  }
  0xba   :  { %1829 = vsyncadd [#allocation18], 4294965248  ;;  %vm192_vm0 = vcmask 261120   ;;  %v186_v0 = vld [vmem:[#allocation8] sm:$0xff]  ;;  %v187_v1 = vld [vmem:[#allocation8 + $0x8] sm:$0xff]  ;;  %v1844_v59 = vmov 0.0|0.0  }
  0xbb   :  { %v188_v2 = vld [vmem:[#allocation8 + $0x10] sm:$0xff]  ;;  %v1387_v3 = vpack.c.bf16 %v187_v1, %v186_v0  ;;  %v189_v4 = vld [vmem:[#allocation8 + $0x18] sm:$0xff]  ;;  %v190_v5 = vld [vmem:[#allocation2] sm:$0xff]  ;;  %1197 = vmatprep.mubr.f32.mxu1 %v186_v0  ;;  %vm1845_vm1 = vmmov 0   ;;  %vm479_vm4 = vcmask 130048   ;;  %vm744_vm6 = vcmask 64512  }
  0xbc   :  { %v1391_v6 = vpack.c.bf16 %v189_v4, %v188_v2  ;;  %1162 = vmatprep.mubr.msk.f32.mxu0 %vm192_vm0, %v190_v5  ;;  %v290_v7 = vld [vmem:[#allocation11] sm:$0xff]  ;;  %v291_v8 = vld [vmem:[#allocation11 + $0x8] sm:$0xff]  ;;  %v292_v9 = vld [vmem:[#allocation11 + $0x10] sm:$0xff]  ;;  %s1847_s20 = smov [#allocation19]  }
  0xbd   :  { %1388 = vmatprep.subr.bf16.mxu0 %v1387_v3  ;;  %v1395_v10 = vpack.c.bf16 %v291_v8, %v290_v7  ;;  %v293_v11 = vld [vmem:[#allocation11 + $0x18] sm:$0xff]  ;;  %v294_v13 = vld [vmem:[#allocation11 + $0x20] sm:$0xff]  ;;  %v295_v14 = vld [vmem:[#allocation11 + $0x28] sm:$0xff]  ;;  %s1015_s17 = sshll.u32 %s1847_s20, 4  ;;  %s1016_s17 = int_to_ptr.vmem [resolvable:$true] %s1015_s17 }
  0xbe   :  { %1390 = vmatpush3.bf16.msra.mxu0 %v1387_v3  ;;  %v1399_v12 = vpack.c.bf16 %v293_v11, %v292_v9  ;;  %v1403_v15 = vpack.c.bf16 %v295_v14, %v294_v13  ;;  %v191_v16 = vld [vmem:[#allocation2 + $0x8] sm:$0xff]  ;;  %v296_v17 = vld [vmem:[#allocation11 + $0x30] sm:$0xff]  ;;  %v297_v18 = vld [vmem:[#allocation11 + $0x38] sm:$0xff]  ;;  %s1796_s8 = scalar_lea.vmem %s1016_s17, 128  ;;  %p1801_p11 = scmp.lt.s32.totalorder %s1016_s17, %s1016_s17 }
  0xbf   :  { %1392 = vmatprep.subr.bf16.mxu0 %v1391_v6  ;;  %1396 = vmatprep.subr.bf16.mxu1 %v1395_v10  ;;  %v1407_v19 = vpack.c.bf16 %v297_v18, %v296_v17  ;;  %v298_v20 = vld [vmem:[#allocation11 + $0x40] sm:$0xff]  ;;  %v299_v21 = vld [vmem:[#allocation11 + $0x48] sm:$0xff]  ;;  %v300_v23 = vld [vmem:[#allocation11 + $0x50] sm:$0xff]  ;;  %p1797_p10 = scmp.ne.s32.totalorder %s1016_s17, %s1796_s8  ;;  %p1802_p12 = scmp.lt.s32.totalorder %s1796_s8, %s1796_s8 }
  0xc0   :  { %1398 = vmatpush3.bf16.msra.mxu1 %v1395_v10  ;;  %v1411_v22 = vpack.c.bf16 %v299_v21, %v298_v20  ;;  %v301_v24 = vld [vmem:[#allocation11 + $0x58] sm:$0xff]  ;;  %v302_v26 = vld [vmem:[#allocation11 + $0x60] sm:$0xff]  ;;  %v303_v27 = vld [vmem:[#allocation11 + $0x68] sm:$0xff] }
  0xc1   :  { %1400 = vmatprep.subr.bf16.mxu1 %v1399_v12  ;;  %v1415_v25 = vpack.c.bf16 %v301_v24, %v300_v23  ;;  %v1419_v28 = vpack.c.bf16 %v303_v27, %v302_v26  ;;  %v304_v29 = vld [vmem:[#allocation11 + $0x70] sm:$0xff]  ;;  %v305_v30 = vld [vmem:[#allocation11 + $0x78] sm:$0xff]  ;;  %v274_v32 = vld [vmem:[#allocation10] sm:$0xff]  ;;  %p1803_p13 = por %p1802_p12, %p1801_p11 }
  0xc2   :  { %1394 = vmatpush3.bf16.msra.mxu0 %v1391_v6  ;;  %v1423_v31 = vpack.c.bf16 %v305_v30, %v304_v29  ;;  %v275_v33 = vld [vmem:[#allocation10 + $0x8] sm:$0xff]  ;;  %v276_v35 = vld [vmem:[#allocation10 + $0x10] sm:$0xff]  ;;  %v277_v36 = vld [vmem:[#allocation10 + $0x18] sm:$0xff] }
  0xc3   :  { %v1427_v34 = vpack.c.bf16 %v275_v33, %v274_v32  ;;  %v1431_v37 = vpack.c.bf16 %v277_v36, %v276_v35  ;;  %v278_v38 = vld [vmem:[#allocation10 + $0x20] sm:$0xff]  ;;  %v279_v39 = vld [vmem:[#allocation10 + $0x28] sm:$0xff]  ;;  %v280_v41 = vld [vmem:[#allocation10 + $0x30] sm:$0xff]  ;;  %1462 = vmatprep.subr.bf16.mxu0 %v1844_v59  ;;  %p1804_p0 = pnand %p1803_p13, %p1797_p10 }
  0xc4   :  { %1402 = vmatpush3.bf16.msra.mxu1 %v1399_v12  ;;  %v1435_v40 = vpack.c.bf16 %v279_v39, %v278_v38  ;;  %v281_v42 = vld [vmem:[#allocation10 + $0x38] sm:$0xff]  ;;  %v282_v44 = vld [vmem:[#allocation10 + $0x40] sm:$0xff]  ;;  %v283_v45 = vld [vmem:[#allocation10 + $0x48] sm:$0xff] }
  0xc5   :  { %1163 = vmatmul.mubr.msk.f32.vlgmr.msra.gmra.mrb[0].mxu0 %vm192_vm0, %v191_v16  ;;  %1404 = vmatprep.subr.bf16.mxu1 %v1403_v15  ;;  %v1439_v43 = vpack.c.bf16 %v281_v42, %v280_v41  ;;  %v1443_v46 = vpack.c.bf16 %v283_v45, %v282_v44  ;;  %v284_v47 = vld [vmem:[#allocation10 + $0x50] sm:$0xff]  ;;  %v285_v48 = vld [vmem:[#allocation10 + $0x58] sm:$0xff]  ;;  %v286_v50 = vld [vmem:[#allocation10 + $0x60] sm:$0xff] }
  0xc6   :  { %v1447_v49 = vpack.c.bf16 %v285_v48, %v284_v47  ;;  %v287_v51 = vld [vmem:[#allocation10 + $0x68] sm:$0xff]  ;;  %v288_v53 = vld [vmem:[#allocation10 + $0x70] sm:$0xff]  ;;  %v289_v54 = vld [vmem:[#allocation10 + $0x78] sm:$0xff] }
  0xc7   :  { %v1451_v52 = vpack.c.bf16 %v287_v51, %v286_v50  ;;  %v1455_v55 = vpack.c.bf16 %v289_v54, %v288_v53  ;;  %v569_v56 = vld [vmem:[#allocation14] sm:$0xff]  ;;  %v570_v57 = vld [vmem:[#allocation14 + $0x8] sm:$0xff]  ;;  %v571_v58 = vld [vmem:[#allocation14 + $0x10] sm:$0xff] }
  0xc8   :  { %1406 = vmatpush3.bf16.msra.mxu1 %v1403_v15  ;;  %v1463_v60 = vpack.c.bf16 %v570_v57, %v569_v56  ;;  %v572_v61 = vld [vmem:[#allocation14 + $0x18] sm:$0xff]  ;;  %v573_v63 = vld [vmem:[#allocation14 + $0x20] sm:$0xff]  ;;  %v574_v0 = vld [vmem:[#allocation14 + $0x28] sm:$0xff] }
  0xc9   :  { %1408 = vmatprep.subr.bf16.mxu1 %v1407_v19  ;;  %v1466_v62 = vpack.c.bf16 %v572_v61, %v571_v58  ;;  %v575_v2 = vld [vmem:[#allocation14 + $0x30] sm:$0xff]  ;;  %v576_v3 = vld [vmem:[#allocation14 + $0x38] sm:$0xff]  ;;  %v577_v5 = vld [vmem:[#allocation14 + $0x40] sm:$0xff] }
  0xca   :  { %1464 = vmatpush3.bf16.msra.mxu0 %v1463_v60  ;;  %v1472_v4 = vpack.c.bf16 %v576_v3, %v575_v2  ;;  %v578_v6 = vld [vmem:[#allocation14 + $0x48] sm:$0xff]  ;;  %v579_v8 = vld [vmem:[#allocation14 + $0x50] sm:$0xff]  ;;  %v580_v9 = vld [vmem:[#allocation14 + $0x58] sm:$0xff] }
  0xcb   :  { %1465 = vmatprep.subr.bf16.mxu0 %v1844_v59  ;;  %v1475_v7 = vpack.c.bf16 %v578_v6, %v577_v5  ;;  %v1478_v10 = vpack.c.bf16 %v580_v9, %v579_v8  ;;  %v581_v13 = vld [vmem:[#allocation14 + $0x60] sm:$0xff]  ;;  %v582_v14 = vld [vmem:[#allocation14 + $0x68] sm:$0xff]  ;;  %v583_v16 = vld [vmem:[#allocation14 + $0x70] sm:$0xff] }
  0xcc   :  { %1410 = vmatpush3.bf16.msra.mxu1 %v1407_v19  ;;  %v1481_v15 = vpack.c.bf16 %v582_v14, %v581_v13  ;;  %v584_v17 = vld [vmem:[#allocation14 + $0x78] sm:$0xff]  ;;  %v1846_v19 = vmov 0.0   ;;  %v1031_v20 = vld [vmem:[%s2161_s6] ss:$0 sm:$0xff]  ;;  %v554_v26 = vld [vmem:[#allocation13 + $0x8] sm:$0xff] }
  0xcd   :  { %1412 = vmatprep.subr.bf16.mxu1 %v1411_v22  ;;  %v1484_v18 = vpack.c.bf16 %v584_v17, %v583_v16  ;;  %1274 = vmatprep.mubr.msk.f32.mxu0 %vm1845_vm1, %v1846_v19  ;;  %v555_v32 = vld [vmem:[#allocation13 + $0x10] sm:$0xff]  ;;  %v556_v33 = vld [vmem:[#allocation13 + $0x18] sm:$0xff]  ;;  %v557_v38 = vld [vmem:[#allocation13 + $0x20] sm:$0xff] }
  0xce   :  { %1467 = vmatpush3.bf16.msra.mxu0 %v1466_v62  ;;  %v1490_v36 = vpack.c.bf16 %v556_v33, %v555_v32  ;;  %v558_v39 = vld [vmem:[#allocation13 + $0x28] sm:$0xff]  ;;  %v559_v41 = vld [vmem:[#allocation13 + $0x30] sm:$0xff]  ;;  %v560_v42 = vld [vmem:[#allocation13 + $0x38] sm:$0xff] }
  0xcf   :  { %1468 = vmatprep.subr.bf16.mxu0 %v1844_v59  ;;  %v561_v44 = vld [vmem:[#allocation13 + $0x40] sm:$0xff]  ;;  %v562_v45 = vld [vmem:[#allocation13 + $0x48] sm:$0xff]  ;;  %v563_v47 = vld [vmem:[#allocation13 + $0x50] sm:$0xff] }
  0xd0   :  { %1414 = vmatpush3.bf16.msra.mxu1 %v1411_v22  ;;  %v1032_v22 = vld [vmem:[%s2162_s7] ss:$0 sm:$0xff]  ;;  %v564_v48 = vld [vmem:[#allocation13 + $0x58] sm:$0xff]  ;;  %v566_v51 = vld [vmem:[#allocation13 + $0x68] sm:$0xff] }
  0xd1   :  { %1416 = vmatprep.subr.bf16.mxu1 %v1415_v25  ;;  %v565_v50 = vld [vmem:[#allocation13 + $0x60] sm:$0xff]  ;;  %v567_v53 = vld [vmem:[#allocation13 + $0x70] sm:$0xff]  ;;  %v568_v54 = vld [vmem:[#allocation13 + $0x78] sm:$0xff] }
  0xd2   :  { %v818_v61 = vld [vmem:[#allocation16] sm:$0xff]  ;;  %v819_v62 = vld [vmem:[#allocation16 + $0x8] sm:$0xff]  ;;  %v824_v6 = vld [vmem:[#allocation16 + $0x30] sm:$0xff] }
  0xd3   :  { %v822_v3 = vld [vmem:[#allocation16 + $0x20] sm:$0xff]  ;;  %v829_v13 = vld [vmem:[#allocation16 + $0x58] sm:$0xff]  ;;  %v831_v16 = vld [vmem:[#allocation16 + $0x68] sm:$0xff] }
  0xd4   :  { %1418 = vmatpush3.bf16.msra.mxu1 %v1415_v25  ;;  %v553_v25 = vld [vmem:[#allocation13] sm:$0xff] }
  0xd5   :  { %1420 = vmatprep.subr.bf16.mxu1 %v1419_v28  ;;  %v1487_v30 = vpack.c.bf16 %v554_v26, %v553_v25  ;;  %v826_v9 = vld [vmem:[#allocation16 + $0x40] sm:$0xff] }
  0xd6   :  { %v1035_v26 = vld [vmem:[%s2166_s11] ss:$0 sm:$0xff] }
  0xd8   :  { %1422 = vmatpush3.bf16.msra.mxu1 %v1419_v28 }
  0xd9   :  { %1424 = vmatprep.subr.bf16.mxu1 %v1423_v31 }
  0xdc   :  { %1426 = vmatpush3.bf16.msra.mxu1 %v1423_v31 }
  0xdd   :  { %1428 = vmatprep.subr.bf16.mxu1 %v1427_v34 }
  0xdf   :  { %1198 = vmatmul.mubr.f32.vlgmr.msra.gmra.mrb[0].mxu1 %v187_v1  ;;  %v1469_v1 = vpack.c.bf16 %v574_v0, %v573_v63  ;;  %v820_v63 = vld [vmem:[#allocation16 + $0x10] sm:$0xff]  ;;  %v1535_v0 = vpack.c.bf16 %v819_v62, %v818_v61 }
  0xe0   :  { %1430 = vmatpush3.bf16.msra.mxu1 %v1427_v34 }
  0xe1   :  { %1432 = vmatprep.subr.bf16.mxu1 %v1431_v37  ;;  %1470 = vmatpush3.bf16.msra.mxu0 %v1469_v1  ;;  %v821_v1 = vld [vmem:[#allocation16 + $0x18] sm:$0xff] }
  0xe2   :  { %1471 = vmatprep.subr.bf16.mxu0 %v1844_v59  ;;  %v1538_v2 = vpack.c.bf16 %v821_v1, %v820_v63  ;;  %v1038_v63 = vld [vmem:[%s2170_s15] ss:$0 sm:$0xff] }
  0xe4   :  { %1434 = vmatpush3.bf16.msra.mxu1 %v1431_v37  ;;  %v478_v37 = vld [vmem:[#allocation5] sm:$0xff] }
  0xe5   :  { %1436 = vmatprep.subr.bf16.mxu1 %v1435_v40  ;;  %1473 = vmatpush3.bf16.msra.mxu0 %v1472_v4  ;;  %v823_v4 = vld [vmem:[#allocation16 + $0x28] sm:$0xff] }
  0xe6   :  { %1474 = vmatprep.subr.bf16.mxu0 %v1844_v59  ;;  %v1541_v5 = vpack.c.bf16 %v823_v4, %v822_v3 }
  0xe8   :  { %1438 = vmatpush3.bf16.msra.mxu1 %v1435_v40  ;;  %v1493_v40 = vpack.c.bf16 %v558_v39, %v557_v38  ;;  %v839_v38 = vld [vmem:[#allocation17 + $0x28] sm:$0xff] }
  0xe9   :  { %1440 = vmatprep.subr.bf16.mxu1 %v1439_v43  ;;  %1476 = vmatpush3.bf16.msra.mxu0 %v1475_v7  ;;  %v825_v7 = vld [vmem:[#allocation16 + $0x38] sm:$0xff] }
  0xea   :  { %1477 = vmatprep.subr.bf16.mxu0 %v1844_v59  ;;  %v1544_v8 = vpack.c.bf16 %v825_v7, %v824_v6 }
  0xec   :  { %1442 = vmatpush3.bf16.msra.mxu1 %v1439_v43  ;;  %v1496_v43 = vpack.c.bf16 %v560_v42, %v559_v41  ;;  %v841_v41 = vld [vmem:[#allocation17 + $0x38] sm:$0xff] }
  0xed   :  { %1444 = vmatprep.subr.bf16.mxu1 %v1443_v46  ;;  %1479 = vmatpush3.bf16.msra.mxu0 %v1478_v10  ;;  %v827_v10 = vld [vmem:[#allocation16 + $0x48] sm:$0xff] }
  0xee   :  { %1480 = vmatprep.subr.bf16.mxu0 %v1844_v59 }
  0xf0   :  { %1446 = vmatpush3.bf16.msra.mxu1 %v1443_v46  ;;  %v1499_v46 = vpack.c.bf16 %v562_v45, %v561_v44  ;;  %v843_v44 = vld [vmem:[#allocation17 + $0x48] sm:$0xff] }
  0xf1   :  { %1448 = vmatprep.subr.bf16.mxu1 %v1447_v49  ;;  %1482 = vmatpush3.bf16.msra.mxu0 %v1481_v15  ;;  %v830_v15 = vld [vmem:[#allocation16 + $0x60] sm:$0xff] }
  0xf2   :  { %1483 = vmatprep.subr.bf16.mxu0 %v1844_v59  ;;  %v1553_v17 = vpack.c.bf16 %v831_v16, %v830_v15 }
  0xf4   :  { %1450 = vmatpush3.bf16.msra.mxu1 %v1447_v49  ;;  %v1502_v49 = vpack.c.bf16 %v564_v48, %v563_v47  ;;  %v846_v48 = vld [vmem:[#allocation17 + $0x60] sm:$0xff] }
  0xf5   :  { %1452 = vmatprep.subr.bf16.mxu1 %v1451_v52  ;;  %1485 = vmatpush3.bf16.msra.mxu0 %v1484_v18  ;;  %v832_v18 = vld [vmem:[#allocation16 + $0x70] sm:$0xff] }
  0xf6   :  { %1486 = vmatprep.subr.bf16.mxu0 %v1844_v59 }
  0xf8   :  { %1454 = vmatpush3.bf16.msra.mxu1 %v1451_v52  ;;  %v1505_v52 = vpack.c.bf16 %v566_v51, %v565_v50  ;;  %v848_v51 = vld [vmem:[#allocation17 + $0x70] sm:$0xff] }
  0xf9   :  { %1456 = vmatprep.subr.bf16.mxu1 %v1455_v55 }
  0xfc   :  { %1458 = vmatpush3.bf16.msra.mxu1 %v1455_v55  ;;  %v1508_v55 = vpack.c.bf16 %v568_v54, %v567_v53 }
  0xfd   :  { %1459 = vmatprep.subr.bf16.mxu1 %v1844_v59 }
 0x198   :  { %v1164_v11 = vpop.f32.mrb[0].mxu0 }
 0x199   :  { %v265_v12 = vpop.f32.mrb[1].mxu0 }
 0x19a   :  { %1232 = vmatprep.mubr.f32.mxu1 %v265_v12  ;;  %v828_v12 = vld [vmem:[#allocation16 + $0x50] sm:$0xff] }
 0x19b   :  { %1233 = vmatmul.mubr.f32.vlgmr.msra.gmra.mrb[0].mxu1 %v1164_v11  ;;  %v1547_v11 = vpack.c.bf16 %v827_v10, %v826_v9  ;;  %v1550_v14 = vpack.c.bf16 %v829_v13, %v828_v12 }
 0x19c   :  { %1239 = vmatprep.mubr.msk.f32.mxu1 %vm1845_vm1, %v1846_v19 }
 0x26e   :  { %v1234_v21 = vpop.f32.mrb[0].mxu1 }
 0x26f   :  { %v464_v23 = vadd.f32 %v1234_v21, %v1031_v20  ;;  %v447_v24 = vpop.f32.mrb[1].mxu1 }
 0x270   :  { %v463_v27 = vadd.f32 %v1031_v20, %v447_v24  ;;  %v833_v20 = vld [vmem:[#allocation16 + $0x78] sm:$0xff] }
 0x271   :  { %vm466_vm2 = vcmp.gt.f32.partialorder %v464_v23, 0.0  ;;  %v475_v28 = vmul.f32 %v1032_v22, %v464_v23  ;;  %v1556_v21 = vpack.c.bf16 %v833_v20, %v832_v18 }
 0x272   :  { %vm465_vm3 = vcmp.gt.f32.partialorder %v463_v27, 0.0  ;;  %v474_v29 = vmul.f32 %v1032_v22, %v463_v27 }
 0x273   :  { %v477_v31 = vsel %vm466_vm2, %v464_v23, %v475_v28  ;;  %v1034_v23 = vld [vmem:[%s2165_s10] ss:$0 sm:$0xff] }
 0x274   :  { %v476_v34 = vsel %vm465_vm3, %v463_v27, %v474_v29  ;;  %v834_v28 = vld [vmem:[#allocation17] sm:$0xff]  ;;  %v835_v29 = vld [vmem:[#allocation17 + $0x8] sm:$0xff] }
 0x275   :  { %v1460_v35 = vpack.c.bf16 %v477_v31, %v476_v34  ;;  %1275 = vmatmul.mubr.f32.vlgmr.msra.gmra.mrb[2].mxu0 %v476_v34  ;;  %v743_v31 = vld [vmem:[#allocation7] sm:$0xff]  ;;  %v1511_v32 = vpack.c.bf16 %v835_v29, %v834_v28  ;;  %v836_v34 = vld [vmem:[#allocation17 + $0x10] sm:$0xff] }
 0x276   :  { %1488 = vmatpush3.bf16.msra.mxu0 %v1487_v30  ;;  %1309 = vmatprep.mubr.msk.f32.mxu0 %vm1845_vm1, %v1846_v19 }
 0x277   :  { %1461 = vmatpush3.bf16.msra.mxu1 %v1460_v35  ;;  %1489 = vmatprep.subr.bf16.mxu0 %v1844_v59  ;;  %v837_v35 = vld [vmem:[#allocation17 + $0x18] sm:$0xff] }
 0x278   :  { %1312 = vmatprep.subr.mxu1 %v1846_v19 }
 0x27a   :  { %1240 = vmatmul.mubr.msk.f32.vlgmr.msra.gmra.mrb[2].mxu1 %vm479_vm4, %v478_v37  ;;  %1491 = vmatpush3.bf16.msra.mxu0 %v1490_v36  ;;  %v1514_v36 = vpack.c.bf16 %v837_v35, %v836_v34  ;;  %v838_v37 = vld [vmem:[#allocation17 + $0x20] sm:$0xff] }
 0x27b   :  { %1492 = vmatprep.subr.bf16.mxu0 %v1844_v59  ;;  %1314 = vmatprep.mubr.msk.f32.mxu1 %vm1845_vm1, %v1846_v19  ;;  %v1517_v39 = vpack.c.bf16 %v839_v38, %v838_v37 }
 0x27e   :  { %1494 = vmatpush3.bf16.msra.mxu0 %v1493_v40  ;;  %v840_v40 = vld [vmem:[#allocation17 + $0x30] sm:$0xff] }
 0x27f   :  { %1495 = vmatprep.subr.bf16.mxu0 %v1844_v59  ;;  %v1520_v42 = vpack.c.bf16 %v841_v41, %v840_v40 }
 0x282   :  { %1497 = vmatpush3.bf16.msra.mxu0 %v1496_v43  ;;  %v842_v43 = vld [vmem:[#allocation17 + $0x40] sm:$0xff] }
 0x283   :  { %1498 = vmatprep.subr.bf16.mxu0 %v1844_v59  ;;  %v1523_v45 = vpack.c.bf16 %v843_v44, %v842_v43 }
 0x286   :  { %1500 = vmatpush3.bf16.msra.mxu0 %v1499_v46  ;;  %v845_v46 = vld [vmem:[#allocation17 + $0x58] sm:$0xff] }
 0x287   :  { %1501 = vmatprep.subr.bf16.mxu0 %v1844_v59 }
 0x28a   :  { %1503 = vmatpush3.bf16.msra.mxu0 %v1502_v49  ;;  %v847_v49 = vld [vmem:[#allocation17 + $0x68] sm:$0xff] }
 0x28b   :  { %1504 = vmatprep.subr.bf16.mxu0 %v1844_v59  ;;  %v1529_v50 = vpack.c.bf16 %v847_v49, %v846_v48 }
 0x28e   :  { %1506 = vmatpush3.bf16.msra.mxu0 %v1505_v52  ;;  %v849_v52 = vld [vmem:[#allocation17 + $0x78] sm:$0xff] }
 0x28f   :  { %1507 = vmatprep.subr.bf16.mxu0 %v1844_v59  ;;  %v1532_v53 = vpack.c.bf16 %v849_v52, %v848_v51 }
 0x292   :  { %1509 = vmatpush3.bf16.msra.mxu0 %v1508_v55 }
 0x293   :  { %1534 = vmatprep.subr.bf16.mxu0 %v1844_v59 }
 0x348   :  { %v651_v56 = vpop.f32.mrb[2].mxu0 }
 0x349   :  { %v1276_v57 = vpop.f32.mrb[3].mxu0 }
 0x34d   :  { %v549_v58 = vpop.f32.mrb[2].mxu1 }
 0x34e   :  { %v1241_v60 = vpop.f32.mrb[3].mxu1  ;;  %1310 = vmatmul.mubr.f32.vlgmr.msra.gmra.mrb[4].mxu0 %v549_v58 }
 0x34f   :  { %1384 = vmatprep.mubr.msk.f32.mxu0 %vm1845_vm1, %v1846_v19  ;;  %1536 = vmatpush3.bf16.msra.mxu0 %v1535_v0  ;;  %v1037_v60 = vld [vmem:[%s2169_s14] ss:$0 sm:$0xff] }
 0x350   :  { %1537 = vmatprep.subr.bf16.mxu0 %v1844_v59 }
 0x353   :  { %1539 = vmatpush3.bf16.msra.mxu0 %v1538_v2 }
 0x354   :  { %1540 = vmatprep.subr.bf16.mxu0 %v1844_v59 }
 0x357   :  { %1542 = vmatpush3.bf16.msra.mxu0 %v1541_v5 }
 0x358   :  { %1543 = vmatprep.subr.bf16.mxu0 %v1844_v59 }
 0x35b   :  { %1545 = vmatpush3.bf16.msra.mxu0 %v1544_v8 }
 0x35c   :  { %1546 = vmatprep.subr.bf16.mxu0 %v1844_v59 }
 0x35f   :  { %1548 = vmatpush3.bf16.msra.mxu0 %v1547_v11 }
 0x360   :  { %1549 = vmatprep.subr.bf16.mxu0 %v1844_v59 }
 0x363   :  { %1551 = vmatpush3.bf16.msra.mxu0 %v1550_v14 }
 0x364   :  { %1552 = vmatprep.subr.bf16.mxu0 %v1844_v59 }
 0x367   :  { %1554 = vmatpush3.bf16.msra.mxu0 %v1553_v17 }
 0x368   :  { %1555 = vmatprep.subr.bf16.mxu0 %v1844_v59 }
 0x36b   :  { %1557 = vmatpush3.bf16.msra.mxu0 %v1556_v21 }
 0x421   :  { %v721_v22 = vpop.f32.mrb[4].mxu0 }
 0x422   :  { %v722_v24 = vadd.f32 %v721_v22, %v651_v56  ;;  %v1311_v25 = vpop.f32.mrb[5].mxu0 }
 0x424   :  { %v732_v27 = vadd.f32 %v1034_v23, %v722_v24 }
 0x426   :  { %v741_v30 = vmul.f32 %v1035_v26, %v732_v27  ;;  %vm733_vm5 = vcmp.gt.f32.partialorder %v732_v27, 0.0 }
 0x428   :  { %v742_v33 = vsel %vm733_vm5, %v732_v27, %v741_v30 }
 0x429   :  { %1313 = vmatpush3.msra.mxu1 %v742_v33 }
 0x42a   :  { %1315 = vmatmul.mubr.msk.f32.vlgmr.msra.gmra.mrb[4].mxu1 %vm744_vm6, %v743_v31  ;;  %1510 = vmatprep.subr.bf16.mxu1 %v1844_v59 }
 0x42b   :  { %1512 = vmatpush3.bf16.msra.mxu1 %v1511_v32  ;;  %1349 = vmatprep.mubr.msk.f32.mxu1 %vm1845_vm1, %v1846_v19  ;;  %v844_v19 = vld [vmem:[#allocation17 + $0x50] sm:$0xff] }
 0x42c   :  { %1513 = vmatprep.subr.bf16.mxu1 %v1844_v59  ;;  %v1526_v47 = vpack.c.bf16 %v845_v46, %v844_v19 }
 0x42f   :  { %1515 = vmatpush3.bf16.msra.mxu1 %v1514_v36 }
 0x430   :  { %1516 = vmatprep.subr.bf16.mxu1 %v1844_v59 }
 0x433   :  { %1518 = vmatpush3.bf16.msra.mxu1 %v1517_v39 }
 0x434   :  { %1519 = vmatprep.subr.bf16.mxu1 %v1844_v59 }
 0x437   :  { %1521 = vmatpush3.bf16.msra.mxu1 %v1520_v42 }
 0x438   :  { %1522 = vmatprep.subr.bf16.mxu1 %v1844_v59 }
 0x43b   :  { %1524 = vmatpush3.bf16.msra.mxu1 %v1523_v45 }
 0x43c   :  { %1525 = vmatprep.subr.bf16.mxu1 %v1844_v59 }
 0x43f   :  { %1527 = vmatpush3.bf16.msra.mxu1 %v1526_v47 }
 0x440   :  { %1528 = vmatprep.subr.bf16.mxu1 %v1844_v59 }
 0x443   :  { %1530 = vmatpush3.bf16.msra.mxu1 %v1529_v50 }
 0x444   :  { %1531 = vmatprep.subr.bf16.mxu1 %v1844_v59 }
 0x447   :  { %1533 = vmatpush3.bf16.msra.mxu1 %v1532_v53 }
 0x44a   :  { %1350 = vmatmul.mubr.f32.vlgmr.msra.gmra.mrb[6].mxu1 %v742_v33 }
 0x4fd   :  { %v814_v54 = vpop.f32.mrb[4].mxu1 }
 0x4fe   :  { %1385 = vmatmul.mubr.f32.vlgmr.msra.gmra.mrb[6].mxu0 %v814_v54  ;;  %v1316_v55 = vpop.f32.mrb[5].mxu1 }
 0x51d   :  { %v916_v56 = vpop.f32.mrb[6].mxu1 }
 0x51e   :  { %v1351_v57 = vpop.f32.mrb[7].mxu1 }
 0x5d1   :  { %v986_v58 = vpop.f32.mrb[6].mxu0 }
 0x5d2   :  { %v987_v61 = vadd.f32 %v986_v58, %v916_v56  ;;  %v1386_v62 = vpop.f32.mrb[7].mxu0 }
 0x5d4   :  { %v997_v0 = vadd.f32 %v1037_v60, %v987_v61 }
 0x5d6   :  { %v1006_v59 = vmul.f32 %v1038_v63, %v997_v0  ;;  %vm998_vm7 = vcmp.gt.f32.partialorder %v997_v0, 0.0 }
 0x5d8   :  { %v1007_v1 = vsel %vm998_vm7, %v997_v0, %v1006_v59 }
 0x5d9   :  { %1008 = vst [vmem:[#allocation19] sm:$0xff] %v1007_v1 }
 0x5da   :  { %1807 = shalt.err (!%p1804_p0)
}
 0x5db   :  { %s1808_s29 = scalar_lea.hbm %s2171_s16, 128 }
 0x5dc   :  { %p1809_p1 = scmp.ne.s32.totalorder %s2171_s16, %s1808_s29  ;;  %p1812_p2 = scmp.lt.u32.totalorder %s1808_s29, %s2171_s16 }
 0x5de   :  { %p1814_p3 = pnand %p1812_p2, %p1809_p1 }
 0x5e0   :  { %1817 = shalt.err (!%p1814_p3)
}
 0x5e1   :  { %1018 = dma.vmem_to_hbm [thread:$0]  %s1016_s17, 128, %s2171_s16, [#allocation4]  }
 0x5e2   :  { %1830 = dma.done.wait [#allocation4], 128  }
 0x5e3   :  { %1831 = vsyncadd [#allocation4], 4294967168 }
 0x5e4   :  { %1022 = vsyncpa [#allocation3], 1 }
 0x5e5   :  { %1023 = vsyncpa [#allocation6], 1 }
 0x5e6   :  { %1024 = vsyncpa [#allocation9], 1 }
 0x5e7   :  { %1025 = vsyncpa [#allocation12], 1 }
 0x5e8   :  { %1026 = vsyncpa [#allocation15], 1 }
 0x5e9   :  { %1027 = vsyncpa [#allocation18], 1 }
 0x5ea   :  { %1028 = vsyncpa [#allocation4], 1 }

</bundles_post_ra>
